<compile_context>
chip_gen: v7x
topology: tpu7x:2x2x1
jax: 0.10.0
libtpu: 0.0.40
codegen_flags: <defaults>
</compile_context>

<pallas_src>
import functools

import jax
import jax.numpy as jnp
from jax import lax
from jax.experimental import pallas as pl
from jax.experimental.pallas import tpu as pltpu

LANES = 128
NUM_CORES = 2          # leading "parallel" grid axis (v7x 2-TC split); harmless on 1-TC chips
MAX_ACC_ROWS = 32      # up to 4 independent f32 accumulator vregs per core slot
MAX_CHUNK_GROUPS = 8   # inner-loop chunk = up to 8 * acc_rows rows


def _round_down(n, m):
    return (n // m) * m


def _range_loss_kernel(x_ref, out_ref, *, lower, upper, valid_rows,
                       block_rows, chunk_rows, acc_rows, any_partial, unroll):
    c = pl.program_id(0)                 # core slot (parallel axis)
    i = pl.program_id(1)                 # reduction step (arbitrary axis)
    steps_per_core = pl.num_programs(1)

    @pl.when(i == 0)
    def _():
        out_ref[...] = jnp.zeros_like(out_ref)

    # Virtual first row of this (core, step) block in the un-split row space.
    vrow0 = (c * steps_per_core + i) * block_rows
    n_chunks = block_rows // chunk_rows
    groups = chunk_rows // acc_rows

    def accumulate(masked):
        def body(ci, carry):
            start = pl.multiple_of(ci * chunk_rows, chunk_rows)
            xs = x_ref[pl.ds(start, chunk_rows), :].astype(jnp.float32)
            # Out-of-range distance: 0 inside [lower, upper], (x-lower) below,
            # (x-upper) above — identical to the two-mask PyTorch form.
            d = xs - jnp.clip(xs, lower, upper)
            pen = d * d
            if masked:
                row = (vrow0 + start) + lax.broadcasted_iota(
                    jnp.int32, (chunk_rows, LANES), 0)
                pen = jnp.where(row < valid_rows, pen, 0.0)
            # VPU-only partial reduction into acc_rows/8 independent vregs.
            out_ref[...] += pen.reshape(groups, acc_rows, LANES).sum(axis=0)
            return carry

        lax.fori_loop(0, n_chunks, body, 0, unroll=unroll)

    if any_partial:
        # Only blocks that overhang the valid row range pay for the mask.
        needs_mask = vrow0 + block_rows > valid_rows

        @pl.when(jnp.logical_not(needs_mask))
        def _():
            accumulate(False)

        @pl.when(needs_mask)
        def _():
            accumulate(True)
    else:
        accumulate(False)


def _range_penalty(x, lower, upper):
    xf = x.astype(jnp.float32)
    d = xf - jnp.clip(xf, lower, upper)
    return d * d


def range_loss(x, lower, upper, *, target_block_bytes=4 * 1024 * 1024):
    """Scalar float32 loss matching torch range_loss(lower, upper)(x)."""
    lower = float(lower)
    upper = float(upper)
    assert lower <= upper, "range_loss requires lower <= upper"

    total_n = x.size
    itemsize = jnp.dtype(x.dtype).itemsize
    g = {4: 8, 2: 16, 1: 32}.get(itemsize, 8)   # sublane packing of input dtype

    n_rows = total_n // LANES
    n_main = n_rows * LANES

    # Sub-128 flat tail: tiny pure-JAX sum.
    if n_main < total_n:
        xf = x.reshape(-1)
        tail_sum = jnp.sum(_range_penalty(xf[n_main:], lower, upper))
        x2d = xf[:n_main].reshape(n_rows, LANES) if n_rows > 0 else None
    else:
        tail_sum = jnp.float32(0.0)
        x2d = x.reshape(n_rows, LANES) if n_rows > 0 else None  # free for contiguous x

    # Tiny inputs: not worth a kernel launch (and no legal >= 8-row block).
    if n_rows < g:
        small = jnp.sum(_range_penalty(x2d, lower, upper)) if x2d is not None else 0.0
        return (small + tail_sum) / jnp.float32(total_n)

    # ---- static tiling parameters ----------------------------------------
    # Accumulator height: up to MAX_ACC_ROWS rows, multiple of sublane packing.
    acc_rows = max(g, _round_down(min(MAX_ACC_ROWS, n_rows), g))
    # Inner-loop chunk: up to MAX_CHUNK_GROUPS accumulator groups per iteration.
    chunk_rows = acc_rows * max(1, min(MAX_CHUNK_GROUPS, n_rows // acc_rows))
    # Block sized by BYTES (same DMA size for f32 / bf16), multiple of the
    # chunk, never larger than the array.
    target_rows = max(chunk_rows, target_block_bytes // (LANES * itemsize))
    bm = max(chunk_rows, _round_down(min(target_rows, n_rows), chunk_rows))

    total_steps = pl.cdiv(n_rows, bm)
    steps_per_core = pl.cdiv(total_steps, NUM_CORES)
    grid = (NUM_CORES, steps_per_core)
    any_partial = (NUM_CORES * steps_per_core * bm) != n_rows

    block_bytes = bm * LANES * itemsize
    # Double-buffered input + accumulator + slack; >= 32 MiB raises v5e's 16 MiB
    # default, stays within v7x's 64 MiB physical per-core VMEM for default tiles.
    vmem_limit = int(min(96 * 2**20, max(32 * 2**20, 3 * block_bytes + (1 << 20))))

    def in_map(c, i):
        # Fully-virtual blocks (core-split overhang) clamp onto the last real
        # block; their rows are masked to zero inside the kernel.
        return (jnp.minimum(c * steps_per_core + i, total_steps - 1), 0)

    kernel = functools.partial(
        _range_loss_kernel,
        lower=lower, upper=upper,
        valid_rows=n_rows, block_rows=bm, chunk_rows=chunk_rows,
        acc_rows=acc_rows, any_partial=any_partial,
        unroll=int(min(4, bm // chunk_rows)),
    )

    partials = pl.pallas_call(
        kernel,
        out_shape=jax.ShapeDtypeStruct((NUM_CORES * acc_rows, LANES), jnp.float32),
        grid_spec=pltpu.PrefetchScalarGridSpec(
            num_scalar_prefetch=0,
            grid=grid,
            in_specs=[pl.BlockSpec((bm, LANES), in_map)],
            out_specs=pl.BlockSpec((acc_rows, LANES), lambda c, i: (c, 0)),
        ),
        compiler_params=pltpu.CompilerParams(
            dimension_semantics=("parallel", "arbitrary"),
            vmem_limit_bytes=vmem_limit,
        ),
        cost_estimate=pl.CostEstimate(
            flops=5 * n_main,
            transcendentals=0,
            bytes_accessed=n_main * itemsize + NUM_CORES * acc_rows * LANES * 4,
        ),
    )(x2d)

    return (jnp.sum(partials) + tail_sum) / jnp.float32(total_n)


def _range_loss_ref(x, lower, upper):
    xf = x.astype(jnp.float32)
    dmin = xf - lower
    dmax = xf - upper
    mask_min = (dmin < 0).astype(jnp.float32)
    mask_max = (dmax > 0).astype(jnp.float32)
    return jnp.mean(dmin * dmin * mask_min + dmax * dmax * mask_max)


if __name__ == "__main__":
    key = jax.random.PRNGKey(0)
    lower, upper = -1.0, 1.0

    # 1) Primary NCHW case.
    x1 = jax.random.normal(key, (2, 4, 16, 16), dtype=jnp.float32) * 2.0
    out1 = jax.block_until_ready(range_loss(x1, lower, upper))
    ref1 = _range_loss_ref(x1, lower, upper)
    assert jnp.allclose(out1, ref1, rtol=1e-5, atol=1e-6), (out1, ref1)

    # 2) Ragged element count: partial (masked) row block + pure-JAX tail.
    x2 = jax.random.normal(
        jax.random.fold_in(key, 1), (3, 5, 16, 17), dtype=jnp.float32) * 2.0
    out2 = jax.block_until_ready(range_loss(x2, lower, upper))
    ref2 = _range_loss_ref(x2, lower, upper)
    assert jnp.allclose(out2, ref2, rtol=1e-5, atol=1e-6), (out2, ref2)

    # 3) bf16 input stays bf16 across the DMA (halves HBM traffic).
    x3 = (jax.random.normal(
        jax.random.fold_in(key, 2), (2, 4, 16, 16), dtype=jnp.float32) * 2.0
    ).astype(jnp.bfloat16)
    out3 = jax.block_until_ready(range_loss(x3, lower, upper))
    ref3 = _range_loss_ref(x3, lower, upper)
    assert jnp.allclose(out3, ref3, rtol=1e-5, atol=1e-6), (out3, ref3)

    # 4) Larger input, small byte target: multi-step grid on both core slots.
    x4 = jax.random.normal(
        jax.random.fold_in(key, 3), (4, 8, 64, 64), dtype=jnp.float32) * 2.0
    ref4 = _range_loss_ref(x4, lower, upper)
    out4 = jax.block_until_ready(
        range_loss(x4, lower, upper, target_block_bytes=128 * 1024))
    assert jnp.allclose(out4, ref4, rtol=1e-5, atol=1e-6), (out4, ref4)

    # 5) Same input, default byte target: multi-chunk unrolled fori_loop path.
    out5 = jax.block_until_ready(range_loss(x4, lower, upper))
    assert jnp.allclose(out5, ref4, rtol=1e-5, atol=1e-6), (out5, ref4)

    print("KERNEL_OK")
</pallas_src>

<mosaic_0001>
module attributes {stable_mosaic.version = 11 : i64} {
  func.func @_range_loss_kernel(%arg0: i32, %arg1: i32, %arg2: memref<16x128xf32, #tpu.memory_space<vmem>>, %arg3: memref<16x128xf32, #tpu.memory_space<vmem>>) attributes {dimension_semantics = [#tpu.dimension_semantics<parallel>, #tpu.dimension_semantics<arbitrary>], iteration_bounds = array<i64: 2, 1>, scalar_prefetch = 0 : i64, scratch_operands = 0 : i64, tpu.core_type = #tpu.core_type<tc>, window_params = [{transform_indices = @transform_0, window_bounds = array<i64: 16, 128>}, {transform_indices = @transform_1, window_bounds = array<i64: 16, 128>}]} {
    %c0_i32 = arith.constant 0 : i32
    %0 = arith.cmpi eq, %arg1, %c0_i32 : i32
    %1 = arith.extui %0 : i1 to i32
    %c0_i32_0 = arith.constant 0 : i32
    %2 = arith.cmpi ne, %1, %c0_i32_0 : i32
    scf.if %2 {
      %cst = arith.constant 0.000000e+00 : f32
      %13 = vector.broadcast %cst : f32 to vector<16x128xf32>
      %c0 = arith.constant 0 : index
      %c0_5 = arith.constant 0 : index
      %14 = vector.load %arg3[%c0, %c0_5] : memref<16x128xf32, #tpu.memory_space<vmem>>, vector<16x128xf32>
      tpu.vector_store %arg3[%c0, %c0_5], %13 {strides = array<i32>} : memref<16x128xf32, #tpu.memory_space<vmem>>, vector<16x128xf32>,
    } else {
    }
    %c1_i32 = arith.constant 1 : i32
    %3 = arith.muli %arg0, %c1_i32 : i32
    %4 = arith.addi %3, %arg1 : i32
    %c16_i32 = arith.constant 16 : i32
    %5 = arith.muli %4, %c16_i32 : i32
    %c16_i32_1 = arith.constant 16 : i32
    %6 = arith.addi %5, %c16_i32_1 : i32
    %c16_i32_2 = arith.constant 16 : i32
    %7 = arith.cmpi sgt, %6, %c16_i32_2 : i32
    %true = arith.constant true
    %8 = arith.xori %7, %true : i1
    %9 = arith.extui %8 : i1 to i32
    %c0_i32_3 = arith.constant 0 : i32
    %10 = arith.cmpi ne, %9, %c0_i32_3 : i32
    scf.if %10 {
      %c0_i32_5 = arith.constant 0 : i32
      %c16_i32_6 = arith.constant 16 : i32
      %13 = arith.muli %c0_i32_5, %c16_i32_6 : i32
      %14 = tpu.assume_multiple %13, 16 : i32
      %15 = arith.index_cast %14 : i32 to index
      %c0 = arith.constant 0 : index
      %16 = vector.load %arg2[%15, %c0] : memref<16x128xf32, #tpu.memory_space<vmem>>, vector<16x128xf32>
      %cst = arith.constant -1.000000e+00 : f32
      %cst_7 = arith.constant 1.000000e+00 : f32
      %17 = vector.broadcast %cst : f32 to vector<16x128xf32>
      %18 = arith.maximumf %17, %16 : vector<16x128xf32>
      %19 = vector.broadcast %cst_7 : f32 to vector<16x128xf32>
      %20 = arith.minimumf %19, %18 : vector<16x128xf32>
      %21 = arith.subf %16, %20 : vector<16x128xf32>
      %22 = arith.mulf %21, %21 : vector<16x128xf32>
      %c0_8 = arith.constant 0 : index
      %c0_9 = arith.constant 0 : index
      %23 = vector.load %arg3[%c0_8, %c0_9] : memref<16x128xf32, #tpu.memory_space<vmem>>, vector<16x128xf32>
      %24 = vector.shape_cast %22 : vector<16x128xf32> to vector<1x16x128xf32>
      %cst_10 = arith.constant dense<0.000000e+00> : vector<16x128xf32>
      %25 = vector.multi_reduction <add>, %24, %cst_10 [0] : vector<1x16x128xf32> to vector<16x128xf32>
      %26 = arith.addf %23, %25 : vector<16x128xf32>
      %c0_11 = arith.constant 0 : index
      %c0_12 = arith.constant 0 : index
      %27 = vector.load %arg3[%c0_11, %c0_12] : memref<16x128xf32, #tpu.memory_space<vmem>>, vector<16x128xf32>
      tpu.vector_store %arg3[%c0_11, %c0_12], %26 {strides = array<i32>} : memref<16x128xf32, #tpu.memory_space<vmem>>, vector<16x128xf32>,
      %c1_i32_13 = arith.constant 1 : i32
    } else {
    }
    %11 = arith.extui %7 : i1 to i32
    %c0_i32_4 = arith.constant 0 : i32
    %12 = arith.cmpi ne, %11, %c0_i32_4 : i32
    scf.if %12 {
      %c0_i32_5 = arith.constant 0 : i32
      %c16_i32_6 = arith.constant 16 : i32
      %13 = arith.muli %c0_i32_5, %c16_i32_6 : i32
      %14 = tpu.assume_multiple %13, 16 : i32
      %15 = arith.index_cast %14 : i32 to index
      %c0 = arith.constant 0 : index
      %16 = vector.load %arg2[%15, %c0] : memref<16x128xf32, #tpu.memory_space<vmem>>, vector<16x128xf32>
      %cst = arith.constant -1.000000e+00 : f32
      %cst_7 = arith.constant 1.000000e+00 : f32
      %17 = vector.broadcast %cst : f32 to vector<16x128xf32>
      %18 = arith.maximumf %17, %16 : vector<16x128xf32>
      %19 = vector.broadcast %cst_7 : f32 to vector<16x128xf32>
      %20 = arith.minimumf %19, %18 : vector<16x128xf32>
      %21 = arith.subf %16, %20 : vector<16x128xf32>
      %22 = arith.mulf %21, %21 : vector<16x128xf32>
      %23 = arith.addi %5, %14 : i32
      %24 = tpu.iota {dimensions = array<i32: 0>} : vector<16x128xi32>
      %25 = vector.broadcast %23 : i32 to vector<16x128xi32>
      %26 = arith.addi %25, %24 : vector<16x128xi32>
      %c16_i32_8 = arith.constant 16 : i32
      %27 = vector.broadcast %c16_i32_8 : i32 to vector<16x128xi32>
      %28 = arith.cmpi slt, %26, %27 : vector<16x128xi32>
      %cst_9 = arith.constant 0.000000e+00 : f32
      %29 = vector.broadcast %cst_9 : f32 to vector<16x128xf32>
      %30 = arith.select %28, %22, %29 : vector<16x128xi1>, vector<16x128xf32>
      %c0_10 = arith.constant 0 : index
      %c0_11 = arith.constant 0 : index
      %31 = vector.load %arg3[%c0_10, %c0_11] : memref<16x128xf32, #tpu.memory_space<vmem>>, vector<16x128xf32>
      %32 = vector.shape_cast %30 : vector<16x128xf32> to vector<1x16x128xf32>
      %cst_12 = arith.constant dense<0.000000e+00> : vector<16x128xf32>
      %33 = vector.multi_reduction <add>, %32, %cst_12 [0] : vector<1x16x128xf32> to vector<16x128xf32>
      %34 = arith.addf %31, %33 : vector<16x128xf32>
      %c0_13 = arith.constant 0 : index
      %c0_14 = arith.constant 0 : index
      %35 = vector.load %arg3[%c0_13, %c0_14] : memref<16x128xf32, #tpu.memory_space<vmem>>, vector<16x128xf32>
      tpu.vector_store %arg3[%c0_13, %c0_14], %34 {strides = array<i32>} : memref<16x128xf32, #tpu.memory_space<vmem>>, vector<16x128xf32>,
      %c1_i32_15 = arith.constant 1 : i32
    } else {
    }
    return
  }
  func.func @transform_0(%arg0: i32, %arg1: i32) -> (i32, i32) {
    %c1_i32 = arith.constant 1 : i32
    %0 = arith.muli %arg0, %c1_i32 : i32
    %1 = arith.addi %0, %arg1 : i32
    %c0_i32 = arith.constant 0 : i32
    %2 = arith.minsi %1, %c0_i32 : i32
    %c0_i32_0 = arith.constant 0 : i32
    %c0_i32_1 = arith.constant 0 : i32
    return %2, %c0_i32_0 : i32, i32
  }
  func.func @transform_1(%arg0: i32, %arg1: i32) -> (i32, i32) {
    %c0_i32 = arith.constant 0 : i32
    %c0_i32_0 = arith.constant 0 : i32
    return %arg0, %c0_i32 : i32, i32
  }
}

</mosaic_0001>

<bundles_post_ra>
// kernel: tpu_custom_call.1
= control target key start
LH: loop header
LB: loop body
LE: loop exit
PB: predicated region body
PF: predicated region fallthrough
CT: control target
= control target key end

     0   :  { %6 = vsyncpa [#allocation3], 0  ;;  %s775_s0 = inlined_call_operand.hbm [shape: f32[16,128], index: 0, kind: input, shape index: {}]   ;;  %s776_s1 = inlined_call_operand.hbm [shape: f32[32,128], index: 1, kind: output, shape index: {}]  }
   0x1   :  { %8 = vsyncpa [#allocation3 + $0x1], 0 }
   0x2   :  { %9 = vsyncpa [#allocation4], 0 }
   0x3   :  { %11 = vsyncpa [#allocation4 + $0x1], 0  ;;  %s587_s6 = smov 0   ;;  %s589_s7 = smov 0  }
   0x4   :  { %s591_s8 = smov 0   ;;  %s593_s9 = smov 0  }
   0x5   :  { %s595_s10 = smov 0   ;;  %s597_s11 = smov 0  }
   0x6   :  { %s599_s12 = smov 0   ;;  %s601_s13 = smov 0  }
   0x7 LB: > { %s320_s14 = sadd.s32 4294967295, %s568_s13   ;;  %s321_s15 = sadd.s32 4294967294, %s568_s13   ;;  %s568_s13 = sphi %s601_s13, %s17_s13   ;;  %s564_s12 = sphi %s599_s12, %s795_s12   ;;  %s560_s11 = sphi %s597_s11, %s794_s11   ;;  %s556_s10 = sphi %s595_s10, %s765_s10   ;;  %s552_s9 = sphi %s593_s9, %s793_s9   ;;  %s548_s8 = sphi %s591_s8, %s792_s8   ;;  %s544_s7 = sphi %s589_s7, %s791_s7   ;;  %s540_s6 = sphi %s587_s6, %s790_s6  }
   0x8   : > { %s29_s16 = sadd.s32 1, %s564_s12  ;;  %p537_p1 = scmp.ne.s32.totalorder %s556_s10, 0 }
   0x9   : > { %p31_p0 = scmp.ge.s32.totalorder %s29_s16, 2  ;;  %p50_p2 = scmp.eq.s32.totalorder %s568_s13, 0 }
   0xa   : > { %p55_p3 = scmp.ne.s32.totalorder %s556_s10, %s552_s9  ;;  %p56_p5 = scmp.eq.s32.totalorder %s320_s14, 0 }
   0xb   : > { %s797_s16 = smov (%p31_p0, %s29_s16), 0  ;;  %p633_p4 = por %p537_p1, %p50_p2 }
   0xc   : > { %p637_p6 = por %p56_p5, %p55_p3  ;;  %s65_s19 = ssub.s32 %s564_s12, %s797_s16 }
   0xd   : > { %p66_p7 = scmp.eq.s32.totalorder %s65_s19, 0  ;;  %s68_s20 = sadd.s32 1, %s548_s8 }
   0xe   : > { %s781_s18 = scalar_select %p637_p6, 1, 0 }
   0xf   : > { %s645_s21 = scalar_select %p66_p7, %s548_s8, %s68_s20  }
  0x10   : > { %p78_p8 = scmp.ne.s32.totalorder %s548_s8, %s544_s7  ;;  %p79_p9 = scmp.eq.s32.totalorder %s320_s14, 1 }
  0x11   : > { %p84_p10 = scmp.ne.s32.totalorder %s544_s7, %s540_s6  ;;  %p85_p11 = scmp.eq.s32.totalorder %s321_s15, 1 }
  0x12   : > { %p651_p12 = por %p79_p9, %p78_p8  ;;  %p356_p1 = scmp.lt.s32.totalorder %s568_s13, 2 }
  0x13   : > { %p656_p0 = por %p85_p11, %p84_p10  ;;  %s570_s24 = smov [#allocation2]  }
  0x14   : > { %s782_s22 = scalar_select %p651_p12, 1, 0 }
  0x15   : > { %s783_s23 = scalar_select %p656_p0, 1, 0 }
  0x16   : > { %s119_s25 = sshll.u32 %s570_s24, 4  ;;  %p663_p2 = pnand %p356_p1, %p633_p4  ;;  %s120_s25 = int_to_ptr.vmem [resolvable:$true] %s119_s25 }
  0x17   : > { %s435_s29 = scalar_lea.hbm %s775_s0, 256 }
  0x18   : > { %s784_s26 = scalar_select %p663_p2, 1, 0 }
  0x19   : > { %p436_p3 = scmp.ne.s32.totalorder %s775_s0, %s435_s29  ;;  %p437_p5 = pneg %p663_p2 }
  0x1a   : > { %p442_p9 = scmp.lt.u32.totalorder %s435_s29, %s435_s29  ;;  %p444_p4 = scmp.lt.u32.totalorder %s435_s29, %s775_s0 }
  0x1b   : > { %p438_p7 = pnand %p437_p5, %p436_p3 }
  0x1c   : > { %p445_p10 = por %p444_p4, %p442_p9 }
  0x1d   : > { %p439_p8 = pneg %p438_p7 }
  0x1f   : > { %p446_p11 = pnand %p445_p10, %p439_p8 }
  0x21   : > { %449 = shalt.err (!%p446_p11)
}
  0x22   : > { %s450_s5 = scalar_lea.vmem %s120_s25, 256  ;;  %s457_s9 = scalar_lea.vmem %s120_s25, 512 }
  0x23   : > { %p451_p1 = scmp.ne.s32.totalorder %s120_s25, %s450_s5  ;;  %p458_p12 = scmp.lt.s32.totalorder %s120_s25, %s120_s25 }
  0x24   : > { %p459_p6 = scmp.lt.s32.totalorder %s457_s9, %s450_s5 }
  0x25   : > { %p453_p13 = pnand %p451_p1, %p437_p5 }
  0x26   : > { %p460_p2 = por %p459_p6, %p458_p12 }
  0x27   : > { %p454_p0 = pneg %p453_p13 }
  0x29   : > { %p461_p3 = pnand %p460_p2, %p454_p0 }
  0x2b   : > { %464 = shalt.err (!%p461_p3)
}
  0x2c   : > { %s571_s14 = smov 128   ;;  %s572_s15 = smov 8  }
  0x2d   : > { %p785_p7 = scmp.ne.s32.totalorder %s784_s26, 0  ;;  %p327_p8 = scmp.ge.s32.totalorder %s568_s13, 1 }
  0x2e   : > { %p127_p9 = scmp.lt.s32.totalorder %s568_s13, 3 }
  0x2f   : > { %351 = dma.hbm_to_vmem [thread:$0]  (!%p785_p7), %s775_s0, 256, %s120_s25, [#allocation3], %s571_s14, %s571_s14, %s572_s15  }
  0x30   : > { %p128_p5 = pnand %p327_p8, %p127_p9 }
  0x31   : > { %s133_s20 = sand.u32 (!%p128_p5), 1, %s556_s10   ;;  %p786_p6 = scmp.ne.s32.totalorder (!%p128_p5), %s781_s18, 0 }
  0x32   : > { %131 = sbr.rel (%p128_p5) target bundleno = 112 (0x70), region = 24  ;;  %s328_s24 = sshll.u32 (!%p128_p5), %s133_s20, 4 }
  0x33   : > { %s134_s27 = scalar_lea.sflag (!%p128_p5), [#allocation3], %s133_s20  ;;  %s686_s28 = scalar_lea.vmem (!%p128_p5), [#allocation2], %s328_s24 }
  0x39   : > { %530 = dma.done.wait (%p786_p6), %s134_s27, 256  }
  0x3a   : > { %532 = vsyncadd (%p786_p6), %s134_s27, 4294967040  ;;  %s153_s25 = sand.u32 1, %s544_s7   ;;  %s330_s26 = sshll.u32 %s560_s11, 4  ;;  %v573_v0 = vmov 0.0  }
  0x3b   : > { %s329_s29 = sshll.u32 %s153_s25, 4  ;;  %s169_s30 = sadd.s32 16, %s330_s26 }
  0x3c   : > { %s696_s2 = scalar_lea.vmem [#allocation5], %s329_s29  ;;  %p331_p12 = scmp.gt.s32.totalorder %s169_s30, 16 }
  0x3d   : > { %165 = vst [vmem:[%s696_s2] sm:$0xff] %v573_v0  ;;  %166 = vst [vmem:[%s696_s2 + $0x8] sm:$0xff] %v573_v0  ;;  %v175_v1 = vld [vmem:[%s686_s28] sm:$0xff] (!%p331_p12)  ;;  %v176_v2 = vld [vmem:[%s686_s28 + $0x8] sm:$0xff] (!%p331_p12) }
  0x3e   : > { %174 = sbr.rel (%p331_p12) target bundleno = 72 (0x48), region = 36  ;;  %v332_v3 = vclamps-f32 (!%p331_p12), %v175_v1, 1.0  ;;  %v333_v4 = vclamps-f32 (!%p331_p12), %v176_v2, 1.0 }
  0x40   : > { %v181_v5 = vsub.f32 (!%p331_p12), %v175_v1, %v332_v3  ;;  %v182_v6 = vsub.f32 (!%p331_p12), %v176_v2, %v333_v4 }
  0x42   : > { %v183_v9 = vmul.f32 (!%p331_p12), %v181_v5, %v181_v5  ;;  %v184_v10 = vmul.f32 (!%p331_p12), %v182_v6, %v182_v6 }
  0x44   : > { %v185_v7 = vld [vmem:[%s696_s2] sm:$0xff] (!%p331_p12)  ;;  %v186_v8 = vld [vmem:[%s696_s2 + $0x8] sm:$0xff] (!%p331_p12) }
  0x45   : > { %v189_v11 = vadd.f32 %v185_v7, %v183_v9  ;;  %v190_v12 = vadd.f32 %v186_v8, %v184_v10 }
  0x47   : > { %191 = vst [vmem:[%s696_s2] sm:$0xff] %v189_v11  ;;  %192 = vst [vmem:[%s696_s2 + $0x8] sm:$0xff] %v190_v12 }
  0x48 PF: > { %p334_p13 = scmp.le.s32.totalorder %s169_s30, 16 }
  0x49   : > { %v196_v13 = vld [vmem:[%s686_s28] sm:$0xff] (!%p334_p13)  ;;  %v207_v14 = vlaneseq (!%p334_p13)  ;;  %v197_v15 = vld [vmem:[%s686_s28 + $0x8] sm:$0xff] (!%p334_p13)  ;;  %v210_v17 = vstv (!%p334_p13), %s330_s26 }
  0x4a   : > { %195 = sbr.rel (%p334_p13) target bundleno = 86 (0x56), region = 40  ;;  %v335_v16 = vclamps-f32 (!%p334_p13), %v196_v13, 1.0  ;;  %v336_v18 = vclamps-f32 (!%p334_p13), %v197_v15, 1.0 }
  0x4b   : > { %v208_v19 = vshrl.u32 (!%p334_p13), %v207_v14, 7 }
  0x4c   : > { %v202_v20 = vsub.f32 (!%p334_p13), %v196_v13, %v335_v16  ;;  %v203_v21 = vsub.f32 (!%p334_p13), %v197_v15, %v336_v18 }
  0x4d   : > { %v211_v22 = vadd.s32 (!%p334_p13), %v210_v17, %v208_v19  ;;  %v209_v23 = vadd.s32 (!%p334_p13), 8, %v208_v19 }
  0x4e   : > { %v204_v24 = vmul.f32 (!%p334_p13), %v202_v20, %v202_v20  ;;  %v217_v25 = vld [vmem:[%s696_s2] sm:$0xff] (!%p334_p13)  ;;  %v205_v26 = vmul.f32 (!%p334_p13), %v203_v21, %v203_v21  ;;  %v218_v29 = vld [vmem:[%s696_s2 + $0x8] sm:$0xff] (!%p334_p13) }
  0x4f   : > { %vm213_vm0 = vcmp.lt.s32.totalorder (!%p334_p13), %v211_v22, 16  ;;  %v212_v27 = vadd.s32 (!%p334_p13), %v210_v17, %v209_v23 }
  0x50   : > { %v215_v28 = vsel (!%p334_p13), %vm213_vm0, %v204_v24, 0.0 }
  0x51   : > { %v221_v30 = vadd.f32 %v217_v25, %v215_v28  ;;  %vm214_vm1 = vcmp.lt.s32.totalorder %v212_v27, 16 }
  0x52   : > { %v216_v31 = vsel %vm214_vm1, %v205_v26, 0.0 }
  0x53   : > { %223 = vst [vmem:[%s696_s2] sm:$0xff] %v221_v30  ;;  %v222_v32 = vadd.f32 %v218_v29, %v216_v31 }
  0x55   : > { %224 = vst [vmem:[%s696_s2 + $0x8] sm:$0xff] %v222_v32 }
  0x56 PF: > { %s343_s18 = sshll.u32 %s560_s11, 8  ;;  %s239_s9 = sshll.u32 %s696_s2, 4  ;;  %s719_s9 = int_to_ptr.vmem [resolvable:$true] %s239_s9 }
  0x57   : > { %s716_s5 = scalar_lea.hbm %s776_s1, %s343_s18  ;;  %s723_s14 = scalar_lea.sflag [#allocation4], %s153_s25 }
  0x58   : > { %s465_s15 = scalar_lea.vmem %s719_s9, 256  ;;  %p787_p2 = scmp.ne.s32.totalorder %s782_s22, 0 }
  0x59   : > { %p466_p0 = scmp.ne.s32.totalorder %s719_s9, %s465_s15  ;;  %s574_s11 = smov [#allocation5]  }
  0x5a   : > { %s469_s17 = sshll.u32 %s574_s11, 4  ;;  %s470_s17 = int_to_ptr.vmem [resolvable:$false] %s469_s17 }
  0x5b   : > { %p467_p4 = pnand %p466_p0, %p787_p2  ;;  %s471_s19 = scalar_lea.vmem %s470_s17, 512 }
  0x5c   : > { %p472_p11 = scmp.lt.s32.totalorder %s719_s9, %s470_s17  ;;  %p473_p1 = scmp.lt.s32.totalorder %s471_s19, %s465_s15 }
  0x5d   : > { %p468_p10 = pneg %p467_p4 }
  0x5e   : > { %p474_p3 = por %p473_p1, %p472_p11 }
  0x60   : > { %p475_p7 = pnand %p474_p3, %p468_p10 }
  0x62   : > { %478 = shalt.err (!%p475_p7)
}
  0x63   : > { %s479_s20 = scalar_lea.hbm %s716_s5, 256  ;;  %s483_s28 = scalar_lea.hbm %s776_s1, 512 }
  0x64   : > { %p480_p8 = scmp.ne.s32.totalorder %s716_s5, %s479_s20  ;;  %p484_p6 = scmp.lt.u32.totalorder %s716_s5, %s776_s1 }
  0x65   : > { %p485_p12 = scmp.lt.u32.totalorder %s483_s28, %s479_s20  ;;  %p487_p0 = scmp.lt.u32.totalorder %s479_s20, %s716_s5 }
  0x66   : > { %p481_p9 = pnand %p480_p8, %p787_p2 }
  0x67   : > { %p486_p13 = por %p485_p12, %p484_p6 }
  0x68   : > { %p482_p5 = pneg %p481_p9 }
  0x69   : > { %p488_p4 = por %p487_p0, %p486_p13 }
  0x6b   : > { %p489_p10 = pnand %p488_p4, %p482_p5 }
  0x6d   : > { %492 = shalt.err (!%p489_p10)
}
  0x6e   : > { %s575_s29 = smov 128   ;;  %s576_s30 = smov 8  }
  0x6f   : > { %346 = dma.vmem_to_hbm [thread:$0]  (%p787_p2), %s719_s9, 256, %s716_s5, %s723_s14, %s575_s29, %s575_s29, %s576_s30  }
  0x70 PF: > { %s254_s2 = sand.u32 1, %s540_s6   ;;  %p788_p11 = scmp.ne.s32.totalorder %s783_s23, 0 }
  0x71   : > { %p789_p1 = scmp.ge.s32.totalorder %s568_s13, 2  ;;  %s255_s18 = scalar_lea.sflag [#allocation4], %s254_s2 }
  0x73   : > { %p353_p3 = pnand %p789_p1, %p788_p11 }
  0x75   : > { %534 = dma.done.wait (!%p353_p3), %s255_s18, 256  }
  0x76   : > { %536 = vsyncadd (!%p353_p3), %s255_s18, 4294967040  ;;  %s17_s13 = sadd.s32 1, %s568_s13   ;;  %s790_s6 = smov %s544_s7 }
  0x77   : > { %p14_p7 = scmp.ge.s32.totalorder %s17_s13, 4   ;;  %s791_s7 = smov %s548_s8 }
  0x78   : > { %s792_s8 = smov %s645_s21  ;;  %s793_s9 = smov %s556_s10 }
  0x79   : > { %s765_s10 = smov 0   ;;  %s794_s11 = smov %s564_s12 }
  0x7a   : > { %s795_s12 = smov %s797_s16  ;;  %16 = sbr.rel (!%p14_p7) target bundleno = 7 (0x7), region = 81 }
  0x81   :  { %260 = vsyncpa [#allocation3], 1 }
  0x82   :  { %262 = vsyncpa [#allocation3 + $0x1], 1 }
  0x83   :  { %263 = vsyncpa [#allocation4], 1 }
  0x84   :  { %265 = vsyncpa [#allocation4 + $0x1], 1 }

</bundles_post_ra>
